<compile_context>
chip_gen: v5e
topology: v5e:2x2
jax: 0.10.0
libtpu: 0.0.40
codegen_flags: <defaults>
</compile_context>

<pallas_src>
import functools

import jax
import jax.numpy as jnp
from jax import lax
from jax.experimental import pallas as pl
from jax.experimental.pallas import tpu as pltpu


def _relative_loss_kernel(xf_ref, w_ref, b_ref, gt_ref, mask_ref,
                          out_ref, acc_ref, *, a_valid):
    k = pl.program_id(0)

    # ---- classifier matmul, accumulated over the D (feature) grid axis ------
    @pl.when(k == 0)
    def _():
        acc_ref[...] = jnp.zeros_like(acc_ref)

    # bf16 operands, f32 accumulation on the MXU.
    acc_ref[...] += jnp.dot(xf_ref[...], w_ref[...],
                            preferred_element_type=jnp.float32)

    # ---- softmax / pairwise-KL epilogue on the last K step -------------------
    @pl.when(k == pl.num_programs(0) - 1)
    def _():
        a_pad = w_ref.shape[1]
        lane = lax.broadcasted_iota(jnp.int32, (1, a_pad), 1)
        valid = lane < a_valid                                       # [1, Ap]
        validf = valid.astype(jnp.float32)

        def _log_softmax(z, want_probs):
            zm = jnp.where(valid, z, -1e30)          # exclude pad from max
            m = jnp.max(zm, axis=-1, keepdims=True)
            e = jnp.where(valid, jnp.exp(z - m), 0.0)  # exclude pad from sum
            s = jnp.sum(e, axis=-1, keepdims=True)
            logp = z - m - jnp.log(s)
            if want_probs:
                return logp, e / s                   # reuse exp for probs
            return logp, None

        pre = acc_ref[...] + b_ref[...]                              # [B, Ap]
        lp, _ = _log_softmax(pre, want_probs=False)
        lg, g = _log_softmax(gt_ref[...], want_probs=True)           # g==0 on pads

        d = lg - lp                                  # log(g) - log(p), per row
        # 1/g = exp(-lg), exact; clamp guards f32 overflow if a gt-softmax
        # entry underflows (the reference is astronomically large there too).
        invg = validf * jnp.exp(-jnp.maximum(lg, -60.0))             # [B, Ap]
        dig = d * invg                               # (lg - lp) / g, masked
        gd = g * d                                   # g * (lg - lp)

        # mask-folded pairwise KL:
        #   total = sum_ij mask_ij * sum_k (g_ik/g_jk) * (d_ik - d_jk)
        #         = sum( gd * (mask @ invg) ) - sum( g * (mask @ dig) )
        # Both matmuls are natural [B,B]@[B,Ap] layout -> no RHS transpose.
        mi = jnp.dot(mask_ref[...], invg, preferred_element_type=jnp.float32)
        md = jnp.dot(mask_ref[...], dig, preferred_element_type=jnp.float32)

        out_ref[0, 0] = jnp.sum(gd * mi - g * md)


def relative_loss_pallas(x_f, x_labels, w, b, seen_att):
    """Pallas implementation of relative_loss.forward (classifier = Linear)."""
    B, D = x_f.shape
    A = w.shape[1]
    a_pad = ((A + 127) // 128) * 128

    # K (feature) tiling: single step for small D, 512-wide pipelined tiles else.
    tk = D if D <= 512 else 512
    d_pad = ((D + tk - 1) // tk) * tk
    nk = d_pad // tk

    # glue (wrapper-side): lane/contraction padding, gt gather, pair mask.
    x_p = jnp.pad(x_f.astype(jnp.float32),
                  ((0, 0), (0, d_pad - D))).astype(jnp.bfloat16)
    w_p = jnp.pad(w.astype(jnp.float32),
                  ((0, d_pad - D), (0, a_pad - A))).astype(jnp.bfloat16)
    b_p = jnp.pad(b.astype(jnp.float32).reshape(1, A), ((0, 0), (0, a_pad - A)))
    gt_p = jnp.pad(seen_att[x_labels].astype(jnp.float32),
                   ((0, 0), (0, a_pad - A)))

    lab = x_labels.astype(jnp.int32)
    idx = jnp.arange(B, dtype=jnp.int32)
    pair_mask = ((lab[:, None] == lab[None, :]) &
                 (idx[:, None] < idx[None, :])).astype(jnp.float32)   # [B, B]
    cnt = jnp.sum(pair_mask)

    kernel = functools.partial(_relative_loss_kernel, a_valid=A)
    total = pl.pallas_call(
        kernel,
        out_shape=jax.ShapeDtypeStruct((1, 1), jnp.float32),
        grid_spec=pltpu.PrefetchScalarGridSpec(
            num_scalar_prefetch=0,
            grid=(nk,),
            in_specs=[
                pl.BlockSpec((B, tk), lambda k: (0, k)),       # x_f   (bf16)
                pl.BlockSpec((tk, a_pad), lambda k: (k, 0)),   # w     (bf16)
                pl.BlockSpec((1, a_pad), lambda k: (0, 0)),    # bias  (f32)
                pl.BlockSpec((B, a_pad), lambda k: (0, 0)),    # gt    (f32)
                pl.BlockSpec((B, B), lambda k: (0, 0)),        # pair mask
            ],
            out_specs=pl.BlockSpec(memory_space=pltpu.MemorySpace.SMEM),
            scratch_shapes=[pltpu.VMEM((B, a_pad), jnp.float32)],  # pre-acc
        ),
        compiler_params=pltpu.CompilerParams(
            dimension_semantics=("arbitrary",),
            vmem_limit_bytes=32 * 1024 * 1024),
    )(x_p, w_p, b_p, gt_p, pair_mask)[0, 0]

    # count > 0 -> loss / count ; count == 0 -> loss (== 0.0)
    return jnp.where(cnt > 0.0, total / jnp.maximum(cnt, 1.0), total)


def relative_loss_ref(x_f, x_labels, w, b, seen_att):
    """Pure-JAX reference mirroring the PyTorch loops (f32 throughout)."""
    pre = x_f @ w + b
    gt = seen_att[x_labels]
    p = jax.nn.softmax(pre, axis=-1)
    g = jax.nn.softmax(gt, axis=-1)
    B = x_labels.shape[0]
    labels = [int(v) for v in x_labels]
    loss = jnp.float32(0.0)
    count = 0
    for i in range(B):
        for j in range(i + 1, B):
            if labels[i] == labels[j]:
                count += 1
                t = g[i] / g[j]
                inp = jnp.log(p[i] / p[j])
                loss = loss + jnp.sum(t * (jnp.log(t) - inp))
    return loss / count if count > 0 else loss


if __name__ == "__main__":
    # small, deterministic problem:
    B, D, A, C = 8, 32, 64, 4   # batch, feature dim, attribute dim, #seen classes

    key = jax.random.PRNGKey(0)
    k_x, k_w, k_b, k_att = jax.random.split(key, 4)

    x_f = 0.5 * jax.random.normal(k_x, (B, D), dtype=jnp.float32)
    # classifier = nn.Linear(D, A): deterministic synthetic weights
    w = 0.1 * jax.random.normal(k_w, (D, A), dtype=jnp.float32)
    b = 0.01 * jax.random.normal(k_b, (A,), dtype=jnp.float32)
    seen_att = jax.random.normal(k_att, (C, A), dtype=jnp.float32)
    # labels with repeated classes so that same-label pairs exist
    x_labels = jnp.array([0, 1, 0, 2, 1, 3, 0, 2], dtype=jnp.int32)

    # TODO(synk): the PyTorch try/except around softmax (debug print) has no
    # kernel equivalent and is intentionally omitted.

    loss = relative_loss_pallas(x_f, x_labels, w, b, seen_att)
    loss = jax.block_until_ready(loss)

    ref = relative_loss_ref(x_f, x_labels, w, b, seen_att)
    assert jnp.isfinite(loss), "kernel produced non-finite loss"
    # tolerance accounts for the bf16 classifier-matmul operands (f32 accum).
    assert jnp.allclose(loss, ref, rtol=2e-2, atol=1e-2), (loss, ref)

    print("KERNEL_OK")
</pallas_src>

<mosaic_0001>
module attributes {stable_mosaic.version = 11 : i64} {
  func.func @_relative_loss_kernel(%arg0: i32, %arg1: memref<8x32xbf16, #tpu.memory_space<vmem>>, %arg2: memref<32x128xbf16, #tpu.memory_space<vmem>>, %arg3: memref<1x128xf32, #tpu.memory_space<vmem>>, %arg4: memref<8x128xf32, #tpu.memory_space<vmem>>, %arg5: memref<8x8xf32, #tpu.memory_space<vmem>>, %arg6: memref<1x1xf32, #tpu.memory_space<smem>>, %arg7: memref<8x128xf32, #tpu.memory_space<vmem>>) attributes {dimension_semantics = [#tpu.dimension_semantics<arbitrary>], iteration_bounds = array<i64: 1>, scalar_prefetch = 0 : i64, scratch_operands = 1 : i64, tpu.core_type = #tpu.core_type<tc>, window_params = [{transform_indices = @transform_0, window_bounds = array<i64: 8, 32>}, {transform_indices = @transform_1, window_bounds = array<i64: 32, 128>}, {pipeline_mode = #tpu.pipeline_mode<synchronous>, transform_indices = @transform_2, window_bounds = array<i64: 1, 128>}, {pipeline_mode = #tpu.pipeline_mode<synchronous>, transform_indices = @transform_3, window_bounds = array<i64: 8, 128>}, {pipeline_mode = #tpu.pipeline_mode<synchronous>, transform_indices = @transform_4, window_bounds = array<i64: 8, 8>}, {transform_indices = @transform_5, window_bounds = array<i64: 1, 1>}]} {
    %c0_i32 = arith.constant 0 : i32
    %0 = arith.cmpi eq, %arg0, %c0_i32 : i32
    %1 = arith.extui %0 : i1 to i32
    %c0_i32_0 = arith.constant 0 : i32
    %2 = arith.cmpi ne, %1, %c0_i32_0 : i32
    scf.if %2 {
      %cst_10 = arith.constant 0.000000e+00 : f32
      %12 = vector.broadcast %cst_10 : f32 to vector<8x128xf32>
      %c0_11 = arith.constant 0 : index
      %c0_12 = arith.constant 0 : index
      %13 = vector.load %arg7[%c0_11, %c0_12] : memref<8x128xf32, #tpu.memory_space<vmem>>, vector<8x128xf32>
      tpu.vector_store %arg7[%c0_11, %c0_12], %12 {strides = array<i32>} : memref<8x128xf32, #tpu.memory_space<vmem>>, vector<8x128xf32>,
    } else {
    }
    %c0 = arith.constant 0 : index
    %c0_1 = arith.constant 0 : index
    %3 = vector.load %arg7[%c0, %c0_1] : memref<8x128xf32, #tpu.memory_space<vmem>>, vector<8x128xf32>
    %c0_2 = arith.constant 0 : index
    %c0_3 = arith.constant 0 : index
    %4 = vector.load %arg1[%c0_2, %c0_3] : memref<8x32xbf16, #tpu.memory_space<vmem>>, vector<8x32xbf16>
    %c0_4 = arith.constant 0 : index
    %c0_5 = arith.constant 0 : index
    %5 = vector.load %arg2[%c0_4, %c0_5] : memref<32x128xbf16, #tpu.memory_space<vmem>>, vector<32x128xbf16>
    %cst = arith.constant dense<0.000000e+00> : vector<8x128xf32>
    %6 = tpu.matmul %4, %5, %cst {dimension_numbers = #tpu.dot_dimension_numbers<[1], [0], [0], [1], [0, 0, 1, 1], [], []>} : vector<8x32xbf16>, vector<32x128xbf16>, vector<8x128xf32> -> vector<8x128xf32>
    %7 = arith.addf %3, %6 : vector<8x128xf32>
    %c0_6 = arith.constant 0 : index
    %c0_7 = arith.constant 0 : index
    %8 = vector.load %arg7[%c0_6, %c0_7] : memref<8x128xf32, #tpu.memory_space<vmem>>, vector<8x128xf32>
    tpu.vector_store %arg7[%c0_6, %c0_7], %7 {strides = array<i32>} : memref<8x128xf32, #tpu.memory_space<vmem>>, vector<8x128xf32>,
    %c0_i32_8 = arith.constant 0 : i32
    %9 = arith.cmpi eq, %arg0, %c0_i32_8 : i32
    %10 = arith.extui %9 : i1 to i32
    %c0_i32_9 = arith.constant 0 : i32
    %11 = arith.cmpi ne, %10, %c0_i32_9 : i32
    scf.if %11 {
      %12 = tpu.iota {dimensions = array<i32: 1>} : vector<1x128xi32>
      %c64_i32 = arith.constant 64 : i32
      %13 = vector.broadcast %c64_i32 : i32 to vector<1x128xi32>
      %14 = arith.cmpi slt, %12, %13 : vector<1x128xi32>
      %15 = arith.extui %14 : vector<1x128xi1> to vector<1x128xi32>
      %16 = arith.sitofp %15 : vector<1x128xi32> to vector<1x128xf32>
      %c0_10 = arith.constant 0 : index
      %c0_11 = arith.constant 0 : index
      %17 = vector.load %arg7[%c0_10, %c0_11] : memref<8x128xf32, #tpu.memory_space<vmem>>, vector<8x128xf32>
      %c0_12 = arith.constant 0 : index
      %c0_13 = arith.constant 0 : index
      %18 = vector.load %arg3[%c0_12, %c0_13] : memref<1x128xf32, #tpu.memory_space<vmem>>, vector<1x128xf32>
      %19 = vector.broadcast %18 : vector<1x128xf32> to vector<8x128xf32>
      %20 = arith.addf %17, %19 : vector<8x128xf32>
      %cst_14 = arith.constant -1.000000e+30 : f32
      %21 = vector.shape_cast %14 : vector<1x128xi1> to vector<1x128xi1>
      %22 = vector.broadcast %21 : vector<1x128xi1> to vector<8x128xi1>
      %23 = vector.broadcast %cst_14 : f32 to vector<8x128xf32>
      %24 = arith.select %22, %20, %23 : vector<8x128xi1>, vector<8x128xf32>
      %cst_15 = arith.constant dense<0xFF800000> : vector<8xf32>
      %25 = vector.multi_reduction <maximumf>, %24, %cst_15 [1] : vector<8x128xf32> to vector<8xf32>
      %26 = vector.shape_cast %25 : vector<8xf32> to vector<8x1xf32>
      %27 = vector.broadcast %26 : vector<8x1xf32> to vector<8x128xf32>
      %28 = arith.subf %20, %27 : vector<8x128xf32>
      %29 = math.exp %28 : vector<8x128xf32>
      %cst_16 = arith.constant 0.000000e+00 : f32
      %30 = vector.shape_cast %14 : vector<1x128xi1> to vector<1x128xi1>
      %31 = vector.broadcast %30 : vector<1x128xi1> to vector<8x128xi1>
      %32 = vector.broadcast %cst_16 : f32 to vector<8x128xf32>
      %33 = arith.select %31, %29, %32 : vector<8x128xi1>, vector<8x128xf32>
      %cst_17 = arith.constant dense<0.000000e+00> : vector<8xf32>
      %34 = vector.multi_reduction <add>, %33, %cst_17 [1] : vector<8x128xf32> to vector<8xf32>
      %35 = vector.shape_cast %34 : vector<8xf32> to vector<8x1xf32>
      %36 = vector.broadcast %26 : vector<8x1xf32> to vector<8x128xf32>
      %37 = arith.subf %20, %36 : vector<8x128xf32>
      %38 = math.log %35 : vector<8x1xf32>
      %39 = vector.broadcast %38 : vector<8x1xf32> to vector<8x128xf32>
      %40 = arith.subf %37, %39 : vector<8x128xf32>
      %c0_18 = arith.constant 0 : index
      %c0_19 = arith.constant 0 : index
      %41 = vector.load %arg4[%c0_18, %c0_19] : memref<8x128xf32, #tpu.memory_space<vmem>>, vector<8x128xf32>
      %cst_20 = arith.constant -1.000000e+30 : f32
      %42 = vector.shape_cast %14 : vector<1x128xi1> to vector<1x128xi1>
      %43 = vector.broadcast %42 : vector<1x128xi1> to vector<8x128xi1>
      %44 = vector.broadcast %cst_20 : f32 to vector<8x128xf32>
      %45 = arith.select %43, %41, %44 : vector<8x128xi1>, vector<8x128xf32>
      %cst_21 = arith.constant dense<0xFF800000> : vector<8xf32>
      %46 = vector.multi_reduction <maximumf>, %45, %cst_21 [1] : vector<8x128xf32> to vector<8xf32>
      %47 = vector.shape_cast %46 : vector<8xf32> to vector<8x1xf32>
      %48 = vector.broadcast %47 : vector<8x1xf32> to vector<8x128xf32>
      %49 = arith.subf %41, %48 : vector<8x128xf32>
      %50 = math.exp %49 : vector<8x128xf32>
      %cst_22 = arith.constant 0.000000e+00 : f32
      %51 = vector.shape_cast %14 : vector<1x128xi1> to vector<1x128xi1>
      %52 = vector.broadcast %51 : vector<1x128xi1> to vector<8x128xi1>
      %53 = vector.broadcast %cst_22 : f32 to vector<8x128xf32>
      %54 = arith.select %52, %50, %53 : vector<8x128xi1>, vector<8x128xf32>
      %cst_23 = arith.constant dense<0.000000e+00> : vector<8xf32>
      %55 = vector.multi_reduction <add>, %54, %cst_23 [1] : vector<8x128xf32> to vector<8xf32>
      %56 = vector.shape_cast %55 : vector<8xf32> to vector<8x1xf32>
      %57 = vector.broadcast %47 : vector<8x1xf32> to vector<8x128xf32>
      %58 = arith.subf %41, %57 : vector<8x128xf32>
      %59 = math.log %56 : vector<8x1xf32>
      %60 = vector.broadcast %59 : vector<8x1xf32> to vector<8x128xf32>
      %61 = arith.subf %58, %60 : vector<8x128xf32>
      %62 = vector.broadcast %56 : vector<8x1xf32> to vector<8x128xf32>
      %63 = arith.divf %54, %62 : vector<8x128xf32>
      %64 = arith.subf %61, %40 : vector<8x128xf32>
      %cst_24 = arith.constant -6.000000e+01 : f32
      %65 = vector.broadcast %cst_24 : f32 to vector<8x128xf32>
      %66 = arith.maximumf %61, %65 : vector<8x128xf32>
      %cst_25 = arith.constant 0.000000e+00 : f32
      %67 = vector.broadcast %cst_25 : f32 to vector<8x128xf32>
      %68 = arith.subf %67, %66 : vector<8x128xf32>
      %69 = math.exp %68 : vector<8x128xf32>
      %70 = vector.broadcast %16 : vector<1x128xf32> to vector<8x128xf32>
      %71 = arith.mulf %70, %69 : vector<8x128xf32>
      %72 = arith.mulf %64, %71 : vector<8x128xf32>
      %73 = arith.mulf %63, %64 : vector<8x128xf32>
      %c0_26 = arith.constant 0 : index
      %c0_27 = arith.constant 0 : index
      %74 = vector.load %arg5[%c0_26, %c0_27] : memref<8x8xf32, #tpu.memory_space<vmem>>, vector<8x8xf32>
      %cst_28 = arith.constant dense<0.000000e+00> : vector<8x128xf32>
      %75 = tpu.matmul %74, %71, %cst_28 {dimension_numbers = #tpu.dot_dimension_numbers<[1], [0], [0], [1], [0, 0, 1, 1], [], []>} : vector<8x8xf32>, vector<8x128xf32>, vector<8x128xf32> -> vector<8x128xf32>
      %c0_29 = arith.constant 0 : index
      %c0_30 = arith.constant 0 : index
      %76 = vector.load %arg5[%c0_29, %c0_30] : memref<8x8xf32, #tpu.memory_space<vmem>>, vector<8x8xf32>
      %cst_31 = arith.constant dense<0.000000e+00> : vector<8x128xf32>
      %77 = tpu.matmul %76, %72, %cst_31 {dimension_numbers = #tpu.dot_dimension_numbers<[1], [0], [0], [1], [0, 0, 1, 1], [], []>} : vector<8x8xf32>, vector<8x128xf32>, vector<8x128xf32> -> vector<8x128xf32>
      %78 = arith.mulf %73, %75 : vector<8x128xf32>
      %79 = arith.mulf %63, %77 : vector<8x128xf32>
      %80 = arith.subf %78, %79 : vector<8x128xf32>
      %81 = vector.shape_cast %80 : vector<8x128xf32> to vector<1x8x128xf32>
      %cst_32 = arith.constant dense<0.000000e+00> : vector<1xf32>
      %82 = vector.multi_reduction <add>, %81, %cst_32 [1, 2] : vector<1x8x128xf32> to vector<1xf32>
      %83 = vector.shape_cast %82 : vector<1xf32> to vector<1x1x1xf32>
      %84 = vector.extract %83[0, 0, 0] : f32 from vector<1x1x1xf32>
      %c0_33 = arith.constant 0 : index
      %c0_34 = arith.constant 0 : index
      %85 = memref.load %arg6[%c0_33, %c0_34] : memref<1x1xf32, #tpu.memory_space<smem>>
      memref.store %84, %arg6[%c0_33, %c0_34] : memref<1x1xf32, #tpu.memory_space<smem>>
    } else {
    }
    return
  }
  func.func @transform_0(%arg0: i32) -> (i32, i32) {
    %c0_i32 = arith.constant 0 : i32
    %c0_i32_0 = arith.constant 0 : i32
    return %c0_i32, %arg0 : i32, i32
  }
  func.func @transform_1(%arg0: i32) -> (i32, i32) {
    %c0_i32 = arith.constant 0 : i32
    %c0_i32_0 = arith.constant 0 : i32
    return %arg0, %c0_i32 : i32, i32
  }
  func.func @transform_2(%arg0: i32) -> (i32, i32) {
    %c0_i32 = arith.constant 0 : i32
    %c0_i32_0 = arith.constant 0 : i32
    %c0_i32_1 = arith.constant 0 : i32
    return %c0_i32, %c0_i32_0 : i32, i32
  }
  func.func @transform_3(%arg0: i32) -> (i32, i32) {
    %c0_i32 = arith.constant 0 : i32
    %c0_i32_0 = arith.constant 0 : i32
    %c0_i32_1 = arith.constant 0 : i32
    return %c0_i32, %c0_i32_0 : i32, i32
  }
  func.func @transform_4(%arg0: i32) -> (i32, i32) {
    %c0_i32 = arith.constant 0 : i32
    %c0_i32_0 = arith.constant 0 : i32
    %c0_i32_1 = arith.constant 0 : i32
    return %c0_i32, %c0_i32_0 : i32, i32
  }
  func.func @transform_5(%arg0: i32) -> (i32, i32) {
    %c0_i32 = arith.constant 0 : i32
    %c0_i32_0 = arith.constant 0 : i32
    %c0_i32_1 = arith.constant 0 : i32
    return %c0_i32, %c0_i32_0 : i32, i32
  }
}

</mosaic_0001>

<bundles_post_ra>
// kernel: tpu_custom_call.1
= control target key start
LH: loop header
LB: loop body
LE: loop exit
PB: predicated region body
PF: predicated region fallthrough
CT: control target
= control target key end

     0   :  { %10 = vsyncpa [#allocation4], 0  ;;  %s475_s0 = inlined_call_operand.hbm [shape: bf16[8,32], index: 0, kind: input, shape index: {}]   ;;  %s476_s1 = inlined_call_operand.hbm [shape: bf16[32,128], index: 1, kind: input, shape index: {}]   ;;  %s477_s2 = inlined_call_operand.vmem [shape: f32[1,128], index: 2, kind: input, shape index: {}]   ;;  %s478_s3 = inlined_call_operand.hbm [shape: f32[8,128], index: 3, kind: input, shape index: {}]   ;;  %s479_s4 = inlined_call_operand.hbm [shape: f32[8,8], index: 4, kind: input, shape index: {}]   ;;  %s480_s5 = inlined_call_operand.hbm [shape: f32[1,1], index: 5, kind: output, shape index: {}]  }
   0x1   :  { %11 = vsyncpa [#allocation7], 0 }
   0x2   :  { %12 = vsyncpa [#allocation10], 0  ;;  %s29_s20 = sshll.u32 %s476_s1, 4  ;;  %s30_s20 = int_to_ptr.hbm [resolvable:$true] %s29_s20 }
   0x3   :  { %13 = vsyncpa [#allocation5], 0  ;;  %s414_s21 = smov [#allocation6]   ;;  %s19_s25 = sshll.u32 %s475_s0, 4  ;;  %s20_s25 = int_to_ptr.hbm [resolvable:$true] %s19_s25 }
   0x4   :  { %s31_s22 = sshll.u32 %s414_s21, 4  ;;  %s415_s26 = smov 64   ;;  %s32_s22 = int_to_ptr.vmem [resolvable:$true] %s31_s22 }
   0x5   :  { %s416_s27 = smov 4   ;;  %s417_s28 = smov [#allocation3]  }
   0x6   :  { %37 = dma.hbm_to_vmem [thread:$0]  %s30_s20, 256, %s32_s22, [#allocation7], %s415_s26, %s415_s26, %s416_s27  }
   0x7   :  { %s21_s29 = sshll.u32 %s417_s28, 4  ;;  %s45_s7 = sshll.u32 %s478_s3, 4  ;;  %s22_s29 = int_to_ptr.vmem [resolvable:$true] %s21_s29  ;;  %s46_s7 = int_to_ptr.hbm [resolvable:$true] %s45_s7 }
   0x8   :  { %24 = dma.hbm_to_vmem [thread:$0]  %s20_s25, 64, %s22_s29, [#allocation4]  }
   0x9   :  { %s56_s9 = sshll.u32 %s479_s4, 4  ;;  %s418_s10 = smov [#allocation8]   ;;  %s57_s9 = int_to_ptr.hbm [resolvable:$true] %s56_s9 }
   0xa   :  { %s47_s11 = sshll.u32 %s418_s10, 4  ;;  %s419_s0 = smov [#allocation9]   ;;  %s48_s11 = int_to_ptr.vmem [resolvable:$true] %s47_s11 }
   0xb   :  { %50 = dma.hbm_to_vmem [thread:$0]  %s46_s7, 128, %s48_s11, [#allocation7]  }
   0xc   :  { %s58_s12 = sshll.u32 %s419_s0, 4  ;;  %s59_s12 = int_to_ptr.vmem [resolvable:$true] %s58_s12 }
   0xd   :  { %61 = dma.hbm_to_vmem [thread:$0]  %s57_s9, 128, %s59_s12, [#allocation10]  }
   0xe   :  { %406 = dma.done.wait [#allocation4], 64  }
   0xf   :  { %407 = vsyncadd [#allocation4], 4294967232 }
  0x10   :  { %408 = dma.done.wait [#allocation7], 384  }
  0x11   :  { %409 = vsyncadd [#allocation7], 4294966912 }
  0x12   :  { %410 = dma.done.wait [#allocation10], 128  }
  0x13   :  { %411 = vsyncadd [#allocation10], 4294967168  ;;  %v124_v0 = vlaneseq  ;;  %v148_v2 = vld [vmem:[#allocation8] sm:$0xff]  ;;  %v274_v3 = vld [vmem:[#allocation6 + $0x8] sm:$0xff]  ;;  %vm102_vm1 = vcmask 261120   ;;  %v420_v29 = vmov 0.0  }
  0x14   :  { %112 = vmatpush.bf16.msra.mxu0 %v274_v3  ;;  %v273_v5 = vld [vmem:[#allocation6] sm:$0xff]  ;;  %v85_v6 = vld [vmem:[#allocation3] sm:$0xf]  ;;  %vm185_vm2 = vcmask 64512   ;;  %s248_s14 = sshll.u32 %s480_s5, 4  ;;  %s421_s16 = smov [#allocation11]   ;;  %s249_s14 = int_to_ptr.hbm [resolvable:$true] %s248_s14 }
  0x15   :  { %v125_v1 = vand.u32 127, %v124_v0  ;;  %v285_v12 = vld [vmem:[%s477_s2] ss:$0 sm:$0xff] }
  0x16   :  { %v184_v33 = vld [vmem:[#allocation9] sm:$0xff] }
  0x17   :  { %vm126_vm0 = vcmp.lt.s32.totalorder %v125_v1, 64 }
  0x18   :  { %v149_v4 = vsel %vm126_vm0, %v148_v2, -1e+30  ;;  %113 = vmatpush.bf16.msra.mxu0 %v273_v5  ;;  %v270_v30 = vsel %vm126_vm0, 1.0, %v420_v29 }
  0x19   :  { %150 = vmax.xlane.f32.xlu0 %v149_v4 }
  0x1b   :  { %269 = vmatmul.msk.bf16.vlgmr.msra.gmra.mxu0 %vm102_vm1, %v85_v6 }
  0x8c   :  { %v151_v7 = vpop.xlane.xlu0 %150 }
  0x8d   :  { %v152_v8 = vsub.f32 %v148_v2, %v151_v7 }
  0x8f   :  { %v153_v9 = vmul.f32 1.442695, %v152_v8 }
  0x91   :  { %286 = vpow2.f32 %v153_v9 }
  0x97   :  { %v287_v10 = vpop.eup %286 }
  0x98   :  { %v155_v11 = vsel %vm126_vm0, %v287_v10, 0.0  ;;  %v115_v13 = vpop.f32.mrf.mxu0 }
  0x99   :  { %156 = vadd.xlane.f32.xlu1 %v155_v11  ;;  %v134_v14 = vadd.f32 %v285_v12, %v115_v13 }
  0x9b   :  { %v136_v15 = vsel %vm126_vm0, %v134_v14, -1e+30 }
  0x9c   :  { %137 = vmax.xlane.f32.xlu0 %v136_v15 }
  0xa0   :  { %v117_v16 = vpop.f32.mrf.mxu0 }
 0x10c   :  { %v157_v17 = vpop.xlane.xlu1 %156 }
 0x10d   :  { %288 = vlog2.f32 %v157_v17  ;;  %vm166_vm3 = vweird.f32 %v157_v17  ;;  %v172_v44 = vand.u32 2147483648, %v157_v17  ;;  %v170_v46 = vand.u32 2147483647, %v157_v17 }
 0x10f   :  { %v138_v20 = vpop.xlane.xlu0 %137  ;;  %v173_v47 = vor.u32 1.1754944e-38, %v172_v44  ;;  %vm171_vm6 = vcmp.eq.f32.partialorder %v170_v46, 8.507059e+37 }
 0x110   :  { %v139_v21 = vsub.f32 %v134_v14, %v138_v20 }
 0x112   :  { %v140_v23 = vmul.f32 1.442695, %v139_v21 }
 0x113   :  { %v289_v18 = vpop.eup %288 }
 0x114   :  { %v159_v19 = vmul.f32 0.6931472, %v289_v18  ;;  %290 = vpow2.f32 %v140_v23 }
 0x116   :  { %v160_v22 = vsub.f32 %v152_v8, %v159_v19 }
 0x118   :  { %v177_v24 = vmax.f32 %v160_v22, -60.0 }
 0x11a   :  { %v178_v25 = vsub.f32 0.0, %v177_v24  ;;  %v291_v27 = vpop.eup %290 }
 0x11b   :  { %v142_v28 = vsel %vm126_vm0, %v291_v27, 0.0 }
 0x11c   :  { %v179_v26 = vmul.f32 1.442695, %v178_v25  ;;  %143 = vadd.xlane.f32.xlu1 %v142_v28 }
 0x11e   :  { %292 = vpow2.f32 %v179_v26 }
 0x124   :  { %v293_v31 = vpop.eup %292 }
 0x125   :  { %v181_v32 = vmul.f32 %v293_v31, %v270_v30 }
 0x127   :  { %204 = vmatpush.msra.mxu1 %v181_v32 }
 0x128   :  { %271 = vmatmul.msk.f32.vlgmr.msra.gmra.mxu1 %vm185_vm2, %v184_v33 }
 0x18f   :  { %v144_v34 = vpop.xlane.xlu1 %143 }
 0x190   :  { %294 = vlog2.f32 %v144_v34 }
 0x191   :  { %296 = vrcp.f32 %v157_v17 }
 0x196   :  { %v295_v35 = vpop.eup %294 }
 0x197   :  { %v146_v36 = vmul.f32 0.6931472, %v295_v35  ;;  %v297_v40 = vpop.eup %296 }
 0x198   :  { %v162_v41 = vmul.f32 %v297_v40, %v157_v17  ;;  %vm167_vm4 = vweird.f32 %v297_v40 }
 0x199   :  { %v147_v37 = vsub.f32 %v139_v21, %v146_v36  ;;  %vm168_vm5 = vmor %vm166_vm3, %vm167_vm4 }
 0x19a   :  { %v163_v42 = vsub.f32 1.0, %v162_v41 }
 0x19b   :  { %v176_v38 = vsub.f32 %v160_v22, %v147_v37 }
 0x19c   :  { %v164_v43 = vmul.f32 %v297_v40, %v163_v42 }
 0x19d   :  { %v182_v39 = vmul.f32 %v181_v32, %v176_v38 }
 0x19e   :  { %v165_v45 = vadd.f32 %v297_v40, %v164_v43 }
 0x19f   :  { %224 = vmatpush.msra.mxu2 %v182_v39 }
 0x1a0   :  { %272 = vmatmul.msk.f32.vlgmr.msra.gmra.mxu2 %vm185_vm2, %v184_v33  ;;  %v169_v48 = vsel %vm168_vm5, %v297_v40, %v165_v45 }
 0x1a1   :  { %v174_v49 = vsel %vm171_vm6, %v173_v47, %v169_v48 }
 0x1a2   :  { %v175_v50 = vmul.f32 %v174_v49, %v155_v11 }
 0x1a4   :  { %v183_v52 = vmul.f32 %v176_v38, %v175_v50 }
 0x1a5   :  { %v206_v51 = vpop.f32.mrf.mxu1 }
 0x1a6   :  { %v229_v54 = vmul.f32 %v206_v51, %v183_v52 }
 0x223   :  { %v226_v53 = vpop.f32.mrf.mxu2 }
 0x224   :  { %v230_v55 = vmul.f32 %v226_v53, %v175_v50 }
 0x226   :  { %v231_v56 = vsub.f32 %v229_v54, %v230_v55 }
 0x228   :  { %232 = vadd.xlane.f32.xlu2 %v231_v56 }
 0x29b   :  { %v233_v57 = vpop.xlane.xlu2 %232 }
 0x29c   :  { %v234_v58 = vrot.slane %v233_v57, 4 }
 0x29e   :  { %v235_v59 = vadd.f32 %v234_v58, %v233_v57 }
 0x2a0   :  { %v236_v60 = vrot.slane %v235_v59, 2 }
 0x2a2   :  { %v237_v61 = vadd.f32 %v236_v60, %v235_v59 }
 0x2a4   :  { %v238_v62 = vrot.slane %v237_v61, 1 }
 0x2a6   :  { %v239_v63 = vadd.f32 %v238_v62, %v237_v61 }
 0x2a8   :  { %275 = vpush %v239_v63 }
 0x2d9   :  { %s276_s15 = spop %275 }
 0x2da   :  { %242 = sst [smem:[#allocation11]] %s276_s15 }
 0x2db   :  { %251 = dma.smem_to_hbm %s421_s16, 16, %s249_s14, [#allocation5]  }
 0x2dc   :  { %412 = dma.done.wait [#allocation5], 16  }
 0x2dd   :  { %413 = vsyncadd [#allocation5], 4294967280 }
 0x2de   :  { %256 = sfence }
 0x2df   :  { %257 = vsyncpa [#allocation4], 1 }
 0x2e0   :  { %258 = vsyncpa [#allocation7], 1 }
 0x2e1   :  { %259 = vsyncpa [#allocation10], 1 }
 0x2e2   :  { %260 = vsyncpa [#allocation5], 1 }

</bundles_post_ra>
